<compile_context>
chip_gen: v5e
topology: v5e:2x2
jax: 0.10.0
libtpu: 0.0.40
codegen_flags: <defaults>
</compile_context>

<pallas_src>
import math
import numpy as np
import jax
import jax.numpy as jnp
from jax.experimental import pallas as pl
from jax.experimental.pallas import tpu as pltpu


def _round_up(x, m):
    return ((x + m - 1) // m) * m


def mlp_encoder_kernel(x_ref, w1_ref, b1_ref, w2_ref, b2_ref, o_ref):
    # Hot path: two MXU matmuls (bf16 operands, f32 accumulate) + bias + ReLU.
    x = x_ref[...]                                    # (tb, input_dim)  bf16
    h = jnp.dot(x, w1_ref[...], preferred_element_type=jnp.float32) + b1_ref[...]
    h = jnp.maximum(h, 0.0)                           # ReLU in f32
    y = jnp.dot(h.astype(w2_ref.dtype), w2_ref[...],
                preferred_element_type=jnp.float32) + b2_ref[...]
    o_ref[...] = y.astype(o_ref.dtype)                # lane-dense (tb, out_pad)


def mlp_encoder_forward(x, w1, b1, w2, b2, output_dim, AE=False,
                        compute_dtype=jnp.bfloat16, tile_b=512):
    """Pallas forward for MLP_Encoder.

    x:  (B, input_dim)       w1: (input_dim, hidden)   b1: (1, hidden)
    w2: (hidden, out_cols)   b2: (1, out_cols)         out_cols = output_dim (AE) or 2*output_dim
    """
    B, input_dim = x.shape
    hidden = w1.shape[1]
    out_cols = w2.shape[1]

    LANE = 128
    SUB = 8

    # --- lane-dense output: zero-pad w2/b2 columns to a multiple of 128 ---
    out_pad = _round_up(out_cols, LANE)
    if out_pad != out_cols:
        w2p = jnp.pad(w2, ((0, 0), (0, out_pad - out_cols)))
        b2p = jnp.pad(b2, ((0, 0), (0, out_pad - out_cols)))
    else:
        w2p, b2p = w2, b2

    # --- batch tiling: tb is a multiple of 8 rows; weights stay resident ---
    tb = min(tile_b, _round_up(B, SUB))
    tb = _round_up(tb, SUB)
    B_pad = _round_up(B, tb)
    if B_pad != B:
        xp = jnp.pad(x, ((0, B_pad - B), (0, 0)))
    else:
        xp = x
    grid = (B_pad // tb,)

    # --- bf16 operands for the MXU (f32 accumulation inside the kernel) ---
    xc = xp.astype(compute_dtype)
    w1c = w1.astype(compute_dtype)
    w2c = w2p.astype(compute_dtype)
    b1f = b1.astype(jnp.float32)
    b2f = b2p.astype(jnp.float32)

    y = pl.pallas_call(
        mlp_encoder_kernel,
        out_shape=jax.ShapeDtypeStruct((B_pad, out_pad), jnp.float32),
        grid=grid,
        in_specs=[
            pl.BlockSpec((tb, input_dim), lambda i: (i, 0)),       # x: pipelined per-tile
            pl.BlockSpec((input_dim, hidden), lambda i: (0, 0)),   # w1: VMEM-resident
            pl.BlockSpec((1, hidden), lambda i: (0, 0)),           # b1: VMEM-resident
            pl.BlockSpec((hidden, out_pad), lambda i: (0, 0)),     # w2: VMEM-resident
            pl.BlockSpec((1, out_pad), lambda i: (0, 0)),          # b2: VMEM-resident
        ],
        out_specs=pl.BlockSpec((tb, out_pad), lambda i: (i, 0)),   # lane-dense output
        compiler_params=pltpu.CompilerParams(
            dimension_semantics=("parallel",),        # megacore sharding on v7x; no-op on v5e/v6e
            vmem_limit_bytes=64 * 1024 * 1024,
        ),
    )(xc, w1c, b1f, w2c, b2f)

    y = y[:B]
    if AE:
        return y[:, :out_cols]
    mu = y[:, :output_dim]
    logvar = y[:, output_dim:2 * output_dim]
    return mu, logvar


def init_params(key, input_dim, hidden_size, output_dim, AE=False, dtype=jnp.float32):
    """Deterministic PyTorch-style Linear init (uniform +/- 1/sqrt(fan_in))."""
    out2 = output_dim if AE else 2 * output_dim
    k1, k2, k3, k4 = jax.random.split(key, 4)
    bound1 = 1.0 / math.sqrt(input_dim)
    bound2 = 1.0 / math.sqrt(hidden_size)
    w1 = jax.random.uniform(k1, (input_dim, hidden_size), dtype, -bound1, bound1)
    b1 = jax.random.uniform(k2, (1, hidden_size), dtype, -bound1, bound1)
    w2 = jax.random.uniform(k3, (hidden_size, out2), dtype, -bound2, bound2)
    b2 = jax.random.uniform(k4, (1, out2), dtype, -bound2, bound2)
    return w1, b1, w2, b2


if __name__ == "__main__":
    # Small shapes consistent with the module's forward: x is (batch, input_dim).
    batch, input_dim, hidden_size, output_dim = 8, 32, 64, 16
    key = jax.random.PRNGKey(0)
    kx, kp = jax.random.split(key)
    x = jax.random.normal(kx, (batch, input_dim), jnp.float32)
    w1, b1, w2, b2 = init_params(kp, input_dim, hidden_size, output_dim, AE=False)

    mu, logvar = mlp_encoder_forward(x, w1, b1, w2, b2, output_dim, AE=False)
    mu = jax.block_until_ready(mu)
    logvar = jax.block_until_ready(logvar)

    # Matched-precision pure-JAX reference (bf16 operands, f32 accumulation),
    # mirroring the kernel's compute path.
    xb = x.astype(jnp.bfloat16)
    w1b = w1.astype(jnp.bfloat16)
    w2b = w2.astype(jnp.bfloat16)
    h_ref = jnp.maximum(
        jnp.dot(xb, w1b, preferred_element_type=jnp.float32) + b1, 0.0)
    y_ref = jnp.dot(h_ref.astype(jnp.bfloat16), w2b,
                    preferred_element_type=jnp.float32) + b2
    mu_ref, logvar_ref = y_ref[:, :output_dim], y_ref[:, output_dim:]

    assert mu.shape == (batch, output_dim) and logvar.shape == (batch, output_dim)
    np.testing.assert_allclose(np.asarray(mu), np.asarray(mu_ref), rtol=2e-3, atol=2e-3)
    np.testing.assert_allclose(np.asarray(logvar), np.asarray(logvar_ref), rtol=2e-3, atol=2e-3)

    # Sanity check against the full-f32 math (bf16 operand rounding tolerance).
    h32 = jnp.maximum(x @ w1 + b1, 0.0)
    y32 = h32 @ w2 + b2
    np.testing.assert_allclose(np.asarray(mu), np.asarray(y32[:, :output_dim]),
                               rtol=5e-2, atol=5e-2)

    print("KERNEL_OK")
</pallas_src>

<mosaic_0001>
module attributes {stable_mosaic.version = 11 : i64} {
  func.func @mlp_encoder_kernel(%arg0: i32, %arg1: memref<8x32xbf16, #tpu.memory_space<vmem>>, %arg2: memref<32x64xbf16, #tpu.memory_space<vmem>>, %arg3: memref<1x64xf32, #tpu.memory_space<vmem>>, %arg4: memref<64x128xbf16, #tpu.memory_space<vmem>>, %arg5: memref<1x128xf32, #tpu.memory_space<vmem>>, %arg6: memref<8x128xf32, #tpu.memory_space<vmem>>) attributes {dimension_semantics = [#tpu.dimension_semantics<parallel>], iteration_bounds = array<i64: 1>, scalar_prefetch = 0 : i64, scratch_operands = 0 : i64, tpu.core_type = #tpu.core_type<tc>, window_params = [{transform_indices = @transform_0, window_bounds = array<i64: 8, 32>}, {pipeline_mode = #tpu.pipeline_mode<synchronous>, transform_indices = @transform_1, window_bounds = array<i64: 32, 64>}, {pipeline_mode = #tpu.pipeline_mode<synchronous>, transform_indices = @transform_2, window_bounds = array<i64: 1, 64>}, {pipeline_mode = #tpu.pipeline_mode<synchronous>, transform_indices = @transform_3, window_bounds = array<i64: 64, 128>}, {pipeline_mode = #tpu.pipeline_mode<synchronous>, transform_indices = @transform_4, window_bounds = array<i64: 1, 128>}, {transform_indices = @transform_5, window_bounds = array<i64: 8, 128>}]} {
    %c0 = arith.constant 0 : index
    %c0_0 = arith.constant 0 : index
    %0 = vector.load %arg1[%c0, %c0_0] : memref<8x32xbf16, #tpu.memory_space<vmem>>, vector<8x32xbf16>
    %c0_1 = arith.constant 0 : index
    %c0_2 = arith.constant 0 : index
    %1 = vector.load %arg2[%c0_1, %c0_2] : memref<32x64xbf16, #tpu.memory_space<vmem>>, vector<32x64xbf16>
    %cst = arith.constant dense<0.000000e+00> : vector<8x64xf32>
    %2 = tpu.matmul %0, %1, %cst {dimension_numbers = #tpu.dot_dimension_numbers<[1], [0], [0], [1], [0, 0, 1, 1], [], []>} : vector<8x32xbf16>, vector<32x64xbf16>, vector<8x64xf32> -> vector<8x64xf32>
    %c0_3 = arith.constant 0 : index
    %c0_4 = arith.constant 0 : index
    %3 = vector.load %arg3[%c0_3, %c0_4] : memref<1x64xf32, #tpu.memory_space<vmem>>, vector<1x64xf32>
    %4 = vector.broadcast %3 : vector<1x64xf32> to vector<8x64xf32>
    %5 = arith.addf %2, %4 : vector<8x64xf32>
    %cst_5 = arith.constant 0.000000e+00 : f32
    %6 = vector.broadcast %cst_5 : f32 to vector<8x64xf32>
    %7 = arith.maximumf %5, %6 : vector<8x64xf32>
    %8 = arith.truncf %7 : vector<8x64xf32> to vector<8x64xbf16>
    %c0_6 = arith.constant 0 : index
    %c0_7 = arith.constant 0 : index
    %9 = vector.load %arg4[%c0_6, %c0_7] : memref<64x128xbf16, #tpu.memory_space<vmem>>, vector<64x128xbf16>
    %cst_8 = arith.constant dense<0.000000e+00> : vector<8x128xf32>
    %10 = tpu.matmul %8, %9, %cst_8 {dimension_numbers = #tpu.dot_dimension_numbers<[1], [0], [0], [1], [0, 0, 1, 1], [], []>} : vector<8x64xbf16>, vector<64x128xbf16>, vector<8x128xf32> -> vector<8x128xf32>
    %c0_9 = arith.constant 0 : index
    %c0_10 = arith.constant 0 : index
    %11 = vector.load %arg5[%c0_9, %c0_10] : memref<1x128xf32, #tpu.memory_space<vmem>>, vector<1x128xf32>
    %12 = vector.broadcast %11 : vector<1x128xf32> to vector<8x128xf32>
    %13 = arith.addf %10, %12 : vector<8x128xf32>
    %c0_11 = arith.constant 0 : index
    %c0_12 = arith.constant 0 : index
    %14 = vector.load %arg6[%c0_11, %c0_12] : memref<8x128xf32, #tpu.memory_space<vmem>>, vector<8x128xf32>
    tpu.vector_store %arg6[%c0_11, %c0_12], %13 {strides = array<i32>} : memref<8x128xf32, #tpu.memory_space<vmem>>, vector<8x128xf32>,
    return
  }
  func.func @transform_0(%arg0: i32) -> (i32, i32) {
    %c0_i32 = arith.constant 0 : i32
    %c0_i32_0 = arith.constant 0 : i32
    return %arg0, %c0_i32 : i32, i32
  }
  func.func @transform_1(%arg0: i32) -> (i32, i32) {
    %c0_i32 = arith.constant 0 : i32
    %c0_i32_0 = arith.constant 0 : i32
    %c0_i32_1 = arith.constant 0 : i32
    return %c0_i32, %c0_i32_0 : i32, i32
  }
  func.func @transform_2(%arg0: i32) -> (i32, i32) {
    %c0_i32 = arith.constant 0 : i32
    %c0_i32_0 = arith.constant 0 : i32
    %c0_i32_1 = arith.constant 0 : i32
    return %c0_i32, %c0_i32_0 : i32, i32
  }
  func.func @transform_3(%arg0: i32) -> (i32, i32) {
    %c0_i32 = arith.constant 0 : i32
    %c0_i32_0 = arith.constant 0 : i32
    %c0_i32_1 = arith.constant 0 : i32
    return %c0_i32, %c0_i32_0 : i32, i32
  }
  func.func @transform_4(%arg0: i32) -> (i32, i32) {
    %c0_i32 = arith.constant 0 : i32
    %c0_i32_0 = arith.constant 0 : i32
    %c0_i32_1 = arith.constant 0 : i32
    return %c0_i32, %c0_i32_0 : i32, i32
  }
  func.func @transform_5(%arg0: i32) -> (i32, i32) {
    %c0_i32 = arith.constant 0 : i32
    %c0_i32_0 = arith.constant 0 : i32
    return %arg0, %c0_i32 : i32, i32
  }
}

</mosaic_0001>

<bundles_post_ra>
// kernel: tpu_custom_call.1
= control target key start
LH: loop header
LB: loop body
LE: loop exit
PB: predicated region body
PF: predicated region fallthrough
CT: control target
= control target key end

     0   :  { %10 = vsyncpa [#allocation3], 0  ;;  %s375_s0 = inlined_call_operand.hbm [shape: bf16[8,32], index: 0, kind: input, shape index: {}]   ;;  %s376_s1 = inlined_call_operand.hbm [shape: bf16[32,64], index: 1, kind: input, shape index: {}]   ;;  %s377_s2 = inlined_call_operand.vmem [shape: f32[1,64], index: 2, kind: input, shape index: {}]   ;;  %s378_s3 = inlined_call_operand.hbm [shape: bf16[64,128], index: 3, kind: input, shape index: {}]   ;;  %s379_s4 = inlined_call_operand.vmem [shape: f32[1,128], index: 4, kind: input, shape index: {}]   ;;  %s380_s5 = inlined_call_operand.hbm [shape: f32[8,128], index: 5, kind: output, shape index: {}]  }
   0x1   :  { %11 = vsyncpa [#allocation6], 0  ;;  %s28_s20 = sshll.u32 %s376_s1, 4  ;;  %s29_s20 = int_to_ptr.hbm [resolvable:$true] %s28_s20 }
   0x2   :  { %12 = vsyncpa [#allocation4], 0  ;;  %s321_s21 = smov [#allocation5]   ;;  %s18_s25 = sshll.u32 %s375_s0, 4  ;;  %s19_s25 = int_to_ptr.hbm [resolvable:$true] %s18_s25 }
   0x3   :  { %s30_s22 = sshll.u32 %s321_s21, 4  ;;  %s322_s26 = smov 64   ;;  %s31_s22 = int_to_ptr.vmem [resolvable:$true] %s30_s22 }
   0x4   :  { %s323_s27 = smov 4   ;;  %s324_s28 = smov [#allocation2]  }
   0x5   :  { %36 = dma.hbm_to_vmem [thread:$0]  %s29_s20, 256, %s31_s22, [#allocation6], %s322_s26, %s322_s26, %s323_s27  }
   0x6   :  { %s20_s29 = sshll.u32 %s324_s28, 4  ;;  %s43_s7 = sshll.u32 %s378_s3, 4  ;;  %s21_s29 = int_to_ptr.vmem [resolvable:$true] %s20_s29  ;;  %s44_s7 = int_to_ptr.hbm [resolvable:$true] %s43_s7 }
   0x7   :  { %23 = dma.hbm_to_vmem [thread:$0]  %s19_s25, 64, %s21_s29, [#allocation3]  }
   0x8   :  { %s325_s1 = smov [#allocation7]  }
   0x9   :  { %s45_s8 = sshll.u32 %s325_s1, 4  ;;  %s46_s8 = int_to_ptr.vmem [resolvable:$true] %s45_s8 }
   0xa   :  { %51 = dma.hbm_to_vmem [thread:$0]  %s44_s7, 512, %s46_s8, [#allocation6], %s322_s26, %s322_s26, %s323_s27  }
   0xb   :  { %315 = dma.done.wait [#allocation3], 64  }
   0xc   :  { %316 = vsyncadd [#allocation3], 4294967232 }
   0xd   :  { %317 = dma.done.wait [#allocation6], 768  }
   0xe   :  { %318 = vsyncadd [#allocation6], 4294966528  ;;  %v206_v0 = vld [vmem:[#allocation5 + $0x8] sm:$0xff]  ;;  %v205_v2 = vld [vmem:[#allocation5] sm:$0xff]  ;;  %vm88_vm0 = vcmask 261120   ;;  %vm143_vm1 = vcmask 523264  }
   0xf   :  { %v210_v1 = vld [vmem:[#allocation7 + $0x18] sm:$0xff]  ;;  %98 = vmatpush.bf16.msra.mxu0 %v206_v0  ;;  %v209_v3 = vld [vmem:[#allocation7 + $0x10] sm:$0xff]  ;;  %v67_v4 = vld [vmem:[#allocation2] sm:$0xf]  ;;  %s326_s11 = smov [#allocation8]   ;;  %s168_s15 = sshll.u32 %s380_s5, 4  ;;  %s169_s15 = int_to_ptr.hbm [resolvable:$true] %s168_s15 }
  0x10   :  { %151 = vmatpush.bf16.msra.mxu1 %v210_v1  ;;  %v208_v5 = vld [vmem:[#allocation7 + $0x8] sm:$0xff]  ;;  %v207_v6 = vld [vmem:[#allocation7] sm:$0xff]  ;;  %s166_s12 = sshll.u32 %s326_s11, 4  ;;  %s167_s12 = int_to_ptr.vmem [resolvable:$true] %s166_s12 }
  0x11   :  { %v217_v7 = vld [vmem:[%s377_s2] ss:$0 sm:$0xff] }
  0x12   :  { %v218_v13 = vld [vmem:[%s379_s4] ss:$0 sm:$0xff] }
  0x13   :  { %99 = vmatpush.bf16.msra.mxu0 %v205_v2 }
  0x14   :  { %152 = vmatpush.bf16.msra.mxu1 %v209_v3 }
  0x16   :  { %187 = vmatmul.msk.bf16.vlgmr.msra.gmra.mxu0 %vm88_vm0, %v67_v4 }
  0x18   :  { %153 = vmatpush.bf16.msra.mxu1 %v208_v5 }
  0x1c   :  { %154 = vmatpush.bf16.msra.mxu1 %v207_v6 }
  0x93   :  { %v101_v8 = vpop.f32.mrf.mxu0 }
  0x94   :  { %v102_v9 = vadd.f32 %v217_v7, %v101_v8 }
  0x96   :  { %v105_v10 = vmax.f32 %v102_v9, 0.0 }
  0x98   :  { %v106_v11 = vpack.c.bf16 %v105_v10, %v105_v10 }
  0x9a   :  { %204 = vmatmul.msk.bf16.vlgmr.msra.gmra.mxu1 %vm143_vm1, %v106_v11 }
  0x9b   :  { %v103_v12 = vpop.f32.mrf.mxu0 }
 0x117   :  { %v156_v14 = vpop.f32.mrf.mxu1 }
 0x118   :  { %v157_v15 = vadd.f32 %v218_v13, %v156_v14 }
 0x11a   :  { %160 = vst [vmem:[#allocation8] sm:$0xff] %v157_v15 }
 0x11b   :  { %171 = dma.vmem_to_hbm [thread:$0]  %s167_s12, 128, %s169_s15, [#allocation4]  }
 0x11f   :  { %v158_v16 = vpop.f32.mrf.mxu1 }
 0x120   :  { %319 = dma.done.wait [#allocation4], 128  }
 0x121   :  { %320 = vsyncadd [#allocation4], 4294967168 }
 0x122   :  { %176 = vsyncpa [#allocation3], 1 }
 0x123   :  { %177 = vsyncpa [#allocation6], 1 }
 0x124   :  { %178 = vsyncpa [#allocation4], 1 }

</bundles_post_ra>
